<compile_context>
chip_gen: v6e
topology: v6e:2x2x1
jax: 0.10.0
libtpu: 0.0.40
codegen_flags: <defaults>
</compile_context>

<pallas_src>
import functools

import jax
import jax.numpy as jnp
from jax.experimental import pallas as pl
from jax.experimental.pallas import tpu as pltpu


# ---------------------------------------------------------------------------
# Kernel bodies
# ---------------------------------------------------------------------------

def _squeeze_mlp(pooled, wa, wb, b1, b2, alpha, use_mxu):
    """pooled: (Nb, C) f32  ->  sigmoid gate (Nb, C) f32.

    use_mxu=True : wa = W1^T (C, Cs), wb = W2^T (Cs, C)   (MXU matmuls)
    use_mxu=False: wa = W1   (Cs, C), wb = W2   (C, Cs)   (VPU/XLU matvecs)
    """
    if use_mxu:
        h = jnp.dot(pooled, wa, preferred_element_type=jnp.float32) + b1
    else:
        h = jnp.sum(pooled[:, None, :] * wa[None, :, :], axis=-1) + b1
    # Single-parameter PReLU (PyTorch nn.PReLU() default).
    h = jnp.where(h >= 0.0, h, alpha * h)
    if use_mxu:
        s = jnp.dot(h, wb, preferred_element_type=jnp.float32) + b2
    else:
        s = jnp.sum(h[:, None, :] * wb[None, :, :], axis=-1) + b2
    # Sigmoid: exp on the EUP; the divide only touches one (Nb, C) vreg.
    return 1.0 / (1.0 + jnp.exp(-s))


def _se_kernel(x_ref, wa_ref, wb_ref, b1_ref, b2_ref, alpha_ref, out_ref, *,
               inv_hw, use_mxu):
    """Single-pass kernel; x block = (nb, C, HW), HW need not be 128-aligned."""
    x = x_ref[...]
    pooled = jnp.sum(x.astype(jnp.float32), axis=-1) * inv_hw        # (nb, C)
    s = _squeeze_mlp(pooled, wa_ref[...], wb_ref[...], b1_ref[...],
                     b2_ref[...], alpha_ref[0], use_mxu)             # (nb, C)
    # Dominant HBM write: broadcast of s over the lane (HW) axis.
    out_ref[...] = (x.astype(jnp.float32) * s[:, :, None]).astype(out_ref.dtype)


def _pool_mlp_kernel(x_ref, wa_ref, wb_ref, b1_ref, b2_ref, alpha_ref, s_ref,
                     acc_ref, *, inv_hw, hw, hw_tile, use_mxu):
    """Two-pass fallback, pass 1: pool x over HW tiles, then run the MLP."""
    t = pl.program_id(1)

    @pl.when(t == 0)
    def _():
        acc_ref[...] = jnp.zeros_like(acc_ref)

    x = x_ref[...].astype(jnp.float32)                      # (1, C, hw_tile)
    # Mask lanes past the true HW on the (possibly partial) final tile.
    lane = jax.lax.broadcasted_iota(jnp.int32, x.shape, dimension=2)
    x = jnp.where(t * hw_tile + lane < hw, x, 0.0)
    acc_ref[...] += jnp.sum(x, axis=-1)                     # (1, C)

    @pl.when(t == pl.num_programs(1) - 1)
    def _():
        pooled = acc_ref[...] * inv_hw                      # (1, C)
        s = _squeeze_mlp(pooled, wa_ref[...], wb_ref[...], b1_ref[...],
                         b2_ref[...], alpha_ref[0], use_mxu)
        s_ref[...] = s.reshape(s_ref.shape)                 # (1, 1, C)


def _scale_kernel(x_ref, s_ref, out_ref):
    """Two-pass fallback, pass 2: out = x * s, streamed over (N, HW tiles)."""
    x = x_ref[...].astype(jnp.float32)                      # (1, C, hw_tile)
    scale = s_ref[...][0, 0, :][None, :, None]              # (1, C, 1) f32
    out_ref[...] = (x * scale).astype(out_ref.dtype)


# ---------------------------------------------------------------------------
# Wrapper / tiling policy
# ---------------------------------------------------------------------------

def _round_up(v, m):
    return -(-v // m) * m


def _tpu_config():
    """Generation-aware x-block budget, VMEM limit and core-count hint."""
    vmem_cap = 64 * 1024 * 1024                 # conservative default (v7x-like)
    try:
        info = pltpu.get_tpu_info()
        vmem_cap = int(getattr(info, "vmem_capacity_bytes", vmem_cap))
    except Exception:
        pass
    if vmem_cap >= 100 * 1024 * 1024:
        # v5e / v6e: 128 MiB VMEM, single TensorCore.
        return {"block_budget": 16 * 1024 * 1024,
                "vmem_limit": 96 * 1024 * 1024,
                "multi_core": False}
    # v7x-class: 64 MiB VMEM, two TensorCores.  4x multiplier (double-buffered
    # input + output) on a 12 MiB block stays under a 56 MiB limit.
    return {"block_budget": 12 * 1024 * 1024,
            "vmem_limit": 56 * 1024 * 1024,
            "multi_core": True}


def _pick_batch_block(n, per_elem_bytes, budget_bytes, multi_core):
    """Largest divisor of n whose x block fits the budget.  Only keep >= 2 grid
    steps on multi-TensorCore parts (so the 'parallel' axis can shard); on
    single-TC chips that constraint is pure per-step overhead."""
    max_nb = max(1, budget_bytes // max(per_elem_bytes, 1))
    if multi_core and n >= 2:
        max_nb = min(max_nb, n // 2)
    max_nb = max(1, min(max_nb, n))
    nb = 1
    for d in range(1, max_nb + 1):
        if n % d == 0:
            nb = d
    return nb


def se_layer(x, w1, b1, w2, b2, prelu_a, *, block_budget_bytes=None,
             vmem_limit_bytes=None, donate_x=False):
    """SELayer forward.

    x: (N, C, H, W) (f32 or bf16).  w1: (Cs, C), b1: (Cs,), w2: (C, Cs),
    b2: (C,), prelu_a: scalar (single shared PReLU parameter).
    """
    N, C, H, W = x.shape
    Cs = w1.shape[0]
    HW = H * W

    cfg = _tpu_config()
    block_budget = block_budget_bytes or cfg["block_budget"]
    vmem_limit = vmem_limit_bytes or cfg["vmem_limit"]
    multi_core = cfg["multi_core"]

    x_flat = x.reshape(N, C, HW)                 # layout-preserving, no traffic

    use_mxu = C >= 128                           # MXU only when C is MXU-sized
    if use_mxu:
        wa = w1.T.astype(jnp.float32)            # (C, Cs)
        wb = w2.T.astype(jnp.float32)            # (Cs, C)
    else:
        wa = w1.astype(jnp.float32)              # (Cs, C)
        wb = w2.astype(jnp.float32)              # (C, Cs)
    b1_row = b1.reshape(1, Cs).astype(jnp.float32)
    b2_row = b2.reshape(1, C).astype(jnp.float32)
    # TODO(synk): per-channel PReLU (num_parameters=C) would need a (1, C) VMEM
    # row here instead of a single SMEM scalar.
    alpha = jnp.asarray(prelu_a, jnp.float32).reshape(1)

    itemsize = jnp.dtype(x.dtype).itemsize
    # VMEM footprint of one batch element's x tile (sublane/lane padded layout).
    per_elem = _round_up(C, 8) * _round_up(HW, 128) * itemsize

    # ---------------- single-pass path: whole (nb, C, HW) blocks -------------
    if per_elem <= block_budget:
        nb = _pick_batch_block(N, per_elem, block_budget, multi_core)
        kernel = functools.partial(_se_kernel, inv_hw=1.0 / HW, use_mxu=use_mxu)
        call_kwargs = {"input_output_aliases": {0: 0}} if donate_x else {}
        out_flat = pl.pallas_call(
            kernel,
            out_shape=jax.ShapeDtypeStruct((N, C, HW), x.dtype),
            grid_spec=pltpu.PrefetchScalarGridSpec(
                num_scalar_prefetch=0,
                grid=(N // nb,),
                in_specs=[
                    # Last two block dims equal the full array dims, so HW does
                    # not need to be a multiple of 128 -> no pad/slice round
                    # trip, only a masked tail store per row.
                    pl.BlockSpec((nb, C, HW), lambda i: (i, 0, 0)),
                    pl.BlockSpec(wa.shape, lambda i: (0, 0)),
                    pl.BlockSpec(wb.shape, lambda i: (0, 0)),
                    pl.BlockSpec((1, Cs), lambda i: (0, 0)),
                    pl.BlockSpec((1, C), lambda i: (0, 0)),
                    pl.BlockSpec(memory_space=pltpu.MemorySpace.SMEM),
                ],
                out_specs=pl.BlockSpec((nb, C, HW), lambda i: (i, 0, 0)),
            ),
            compiler_params=pltpu.CompilerParams(
                dimension_semantics=("parallel",),
                vmem_limit_bytes=vmem_limit,
            ),
            **call_kwargs,
        )(x_flat, wa, wb, b1_row, b2_row, alpha)
        return out_flat.reshape(N, C, H, W)

    # ------------- two-pass fallback: HW-tiled pool+MLP, then scale ----------
    hw_tile = (block_budget // (_round_up(C, 8) * itemsize)) // 128 * 128
    hw_tile = max(128, min(hw_tile, _round_up(HW, 128)))
    n_t = pl.cdiv(HW, hw_tile)

    pool_kernel = functools.partial(_pool_mlp_kernel, inv_hw=1.0 / HW, hw=HW,
                                    hw_tile=hw_tile, use_mxu=use_mxu)
    s_gate = pl.pallas_call(
        pool_kernel,
        out_shape=jax.ShapeDtypeStruct((N, 1, C), jnp.float32),
        grid_spec=pltpu.PrefetchScalarGridSpec(
            num_scalar_prefetch=0,
            grid=(N, n_t),
            in_specs=[
                pl.BlockSpec((1, C, hw_tile), lambda n, t: (n, 0, t)),
                pl.BlockSpec(wa.shape, lambda n, t: (0, 0)),
                pl.BlockSpec(wb.shape, lambda n, t: (0, 0)),
                pl.BlockSpec((1, Cs), lambda n, t: (0, 0)),
                pl.BlockSpec((1, C), lambda n, t: (0, 0)),
                pl.BlockSpec(memory_space=pltpu.MemorySpace.SMEM),
            ],
            out_specs=pl.BlockSpec((1, 1, C), lambda n, t: (n, 0, 0)),
            scratch_shapes=[pltpu.VMEM((1, C), jnp.float32)],
        ),
        compiler_params=pltpu.CompilerParams(
            dimension_semantics=("parallel", "arbitrary"),
            vmem_limit_bytes=vmem_limit,
        ),
    )(x_flat, wa, wb, b1_row, b2_row, alpha)

    call_kwargs = {"input_output_aliases": {0: 0}} if donate_x else {}
    out_flat = pl.pallas_call(
        _scale_kernel,
        out_shape=jax.ShapeDtypeStruct((N, C, HW), x.dtype),
        grid_spec=pltpu.PrefetchScalarGridSpec(
            num_scalar_prefetch=0,
            grid=(N, n_t),
            in_specs=[
                pl.BlockSpec((1, C, hw_tile), lambda n, t: (n, 0, t)),
                pl.BlockSpec((1, 1, C), lambda n, t: (n, 0, 0)),
            ],
            out_specs=pl.BlockSpec((1, C, hw_tile), lambda n, t: (n, 0, t)),
        ),
        compiler_params=pltpu.CompilerParams(
            dimension_semantics=("parallel", "parallel"),
            vmem_limit_bytes=vmem_limit,
        ),
        **call_kwargs,
    )(x_flat, s_gate)
    return out_flat.reshape(N, C, H, W)


# ---------------------------------------------------------------------------
# Pure-JAX reference and self-test
# ---------------------------------------------------------------------------

def se_layer_ref(x, w1, b1, w2, b2, prelu_a):
    pooled = jnp.mean(x.astype(jnp.float32), axis=(2, 3))   # (N, C)
    h = pooled @ w1.T + b1                                   # (N, Cs)
    h = jnp.where(h >= 0.0, h, prelu_a * h)
    s = jax.nn.sigmoid(h @ w2.T + b2)                        # (N, C)
    return (x.astype(jnp.float32) * s[:, :, None, None]).astype(x.dtype)


def _make_params(key, C, Cs):
    k1, kb1, k2, kb2 = jax.random.split(key, 4)
    # PyTorch conv weights are (out, in, 1, 1) -> squeezed to (out, in).
    w1 = jax.random.normal(k1, (Cs, C), jnp.float32) * 0.1
    b1 = jax.random.normal(kb1, (Cs,), jnp.float32) * 0.1
    w2 = jax.random.normal(k2, (C, Cs), jnp.float32) * 0.1
    b2 = jax.random.normal(kb2, (C,), jnp.float32) * 0.1
    return w1, b1, w2, b2


def _check(name, x, w1, b1, w2, b2, prelu_a, **kw):
    out = jax.block_until_ready(se_layer(x, w1, b1, w2, b2, prelu_a, **kw))
    ref = se_layer_ref(x, w1, b1, w2, b2, prelu_a)
    assert out.shape == x.shape, name
    assert jnp.allclose(out, ref, atol=1e-4, rtol=1e-4), f"mismatch: {name}"


if __name__ == "__main__":
    key = jax.random.PRNGKey(0)
    prelu_a = 0.25  # nn.PReLU() default init

    # 1) SELayer(inplanes=16, squeeze_ratio=8) on (2, 16, 16, 16):
    #    single-pass path, VPU squeeze MLP, lane-dense HW (= 256).
    kx, kp, key = jax.random.split(key, 3)
    x = jax.random.normal(kx, (2, 16, 16, 16), jnp.float32)
    w1, b1, w2, b2 = _make_params(kp, 16, 2)
    _check("single_pass_dense", x, w1, b1, w2, b2, prelu_a)

    # 2) 7x7 feature map (HW = 49, not a multiple of 128): no pad/slice round
    #    trip; only a masked tail store.
    kx, kp, key = jax.random.split(key, 3)
    x = jax.random.normal(kx, (2, 16, 7, 7), jnp.float32)
    w1, b1, w2, b2 = _make_params(kp, 16, 2)
    _check("single_pass_ragged", x, w1, b1, w2, b2, prelu_a)

    # 3) Two-pass HW-tiled fallback (tiny budget forces it), with a partial
    #    final tile (HW = 144, hw_tile = 128).
    kx, kp, key = jax.random.split(key, 3)
    x = jax.random.normal(kx, (2, 16, 12, 12), jnp.float32)
    w1, b1, w2, b2 = _make_params(kp, 16, 2)
    _check("two_pass_fallback", x, w1, b1, w2, b2, prelu_a,
           block_budget_bytes=8 * 1024)

    # 4) MXU squeeze-MLP path (C >= 128).
    kx, kp, key = jax.random.split(key, 3)
    x = jax.random.normal(kx, (2, 128, 4, 4), jnp.float32)
    w1, b1, w2, b2 = _make_params(kp, 128, 16)
    _check("mxu_mlp", x, w1, b1, w2, b2, prelu_a)

    print("KERNEL_OK")
</pallas_src>

<mosaic_0001>
module attributes {stable_mosaic.version = 11 : i64} {
  func.func @_se_kernel(%arg0: i32, %arg1: memref<1x16x256xf32, #tpu.memory_space<vmem>>, %arg2: memref<2x16xf32, #tpu.memory_space<vmem>>, %arg3: memref<16x2xf32, #tpu.memory_space<vmem>>, %arg4: memref<1x2xf32, #tpu.memory_space<vmem>>, %arg5: memref<1x16xf32, #tpu.memory_space<vmem>>, %arg6: memref<1xf32, #tpu.memory_space<smem>>, %arg7: memref<1x16x256xf32, #tpu.memory_space<vmem>>) attributes {dimension_semantics = [#tpu.dimension_semantics<parallel>], iteration_bounds = array<i64: 2>, scalar_prefetch = 0 : i64, scratch_operands = 0 : i64, tpu.core_type = #tpu.core_type<tc>, window_params = [{transform_indices = @transform_0, window_bounds = array<i64: 1, 16, 256>}, {pipeline_mode = #tpu.pipeline_mode<synchronous>, transform_indices = @transform_1, window_bounds = array<i64: 2, 16>}, {pipeline_mode = #tpu.pipeline_mode<synchronous>, transform_indices = @transform_2, window_bounds = array<i64: 16, 2>}, {pipeline_mode = #tpu.pipeline_mode<synchronous>, transform_indices = @transform_3, window_bounds = array<i64: 1, 2>}, {pipeline_mode = #tpu.pipeline_mode<synchronous>, transform_indices = @transform_4, window_bounds = array<i64: 1, 16>}, {transform_indices = @transform_5, window_bounds = array<i64: 1>}, {transform_indices = @transform_6, window_bounds = array<i64: 1, 16, 256>}]} {
    %c0 = arith.constant 0 : index
    %c0_0 = arith.constant 0 : index
    %c0_1 = arith.constant 0 : index
    %0 = vector.load %arg1[%c0, %c0_0, %c0_1] : memref<1x16x256xf32, #tpu.memory_space<vmem>>, vector<1x16x256xf32>
    %cst = arith.constant dense<0.000000e+00> : vector<1x16xf32>
    %1 = vector.multi_reduction <add>, %0, %cst [2] : vector<1x16x256xf32> to vector<1x16xf32>
    %cst_2 = arith.constant 3.906250e-03 : f32
    %2 = vector.broadcast %cst_2 : f32 to vector<1x16xf32>
    %3 = arith.mulf %1, %2 : vector<1x16xf32>
    %c0_3 = arith.constant 0 : index
    %c0_4 = arith.constant 0 : index
    %4 = vector.load %arg2[%c0_3, %c0_4] : memref<2x16xf32, #tpu.memory_space<vmem>>, vector<2x16xf32>
    %c0_5 = arith.constant 0 : index
    %c0_6 = arith.constant 0 : index
    %5 = vector.load %arg3[%c0_5, %c0_6] : memref<16x2xf32, #tpu.memory_space<vmem>>, vector<16x2xf32>
    %c0_7 = arith.constant 0 : index
    %c0_8 = arith.constant 0 : index
    %6 = vector.load %arg4[%c0_7, %c0_8] : memref<1x2xf32, #tpu.memory_space<vmem>>, vector<1x2xf32>
    %c0_9 = arith.constant 0 : index
    %c0_10 = arith.constant 0 : index
    %7 = vector.load %arg5[%c0_9, %c0_10] : memref<1x16xf32, #tpu.memory_space<vmem>>, vector<1x16xf32>
    %c0_11 = arith.constant 0 : index
    %8 = memref.load %arg6[%c0_11] : memref<1xf32, #tpu.memory_space<smem>>
    %9 = vector.shape_cast %3 : vector<1x16xf32> to vector<1x1x16xf32>
    %10 = vector.shape_cast %4 : vector<2x16xf32> to vector<1x2x16xf32>
    %11 = vector.broadcast %9 : vector<1x1x16xf32> to vector<1x2x16xf32>
    %12 = arith.mulf %11, %10 : vector<1x2x16xf32>
    %cst_12 = arith.constant dense<0.000000e+00> : vector<1x2xf32>
    %13 = vector.multi_reduction <add>, %12, %cst_12 [2] : vector<1x2x16xf32> to vector<1x2xf32>
    %14 = arith.addf %13, %6 : vector<1x2xf32>
    %cst_13 = arith.constant 0.000000e+00 : f32
    %15 = vector.broadcast %cst_13 : f32 to vector<1x2xf32>
    %16 = arith.cmpf oge, %14, %15 : vector<1x2xf32>
    %17 = vector.broadcast %8 : f32 to vector<1x2xf32>
    %18 = arith.mulf %17, %14 : vector<1x2xf32>
    %19 = arith.select %16, %14, %18 : vector<1x2xi1>, vector<1x2xf32>
    %20 = vector.shape_cast %19 : vector<1x2xf32> to vector<1x1x2xf32>
    %21 = vector.shape_cast %5 : vector<16x2xf32> to vector<1x16x2xf32>
    %22 = vector.broadcast %20 : vector<1x1x2xf32> to vector<1x16x2xf32>
    %23 = arith.mulf %22, %21 : vector<1x16x2xf32>
    %cst_14 = arith.constant dense<0.000000e+00> : vector<1x16xf32>
    %24 = vector.multi_reduction <add>, %23, %cst_14 [2] : vector<1x16x2xf32> to vector<1x16xf32>
    %25 = arith.addf %24, %7 : vector<1x16xf32>
    %cst_15 = arith.constant 0.000000e+00 : f32
    %26 = vector.broadcast %cst_15 : f32 to vector<1x16xf32>
    %27 = arith.subf %26, %25 : vector<1x16xf32>
    %28 = math.exp %27 : vector<1x16xf32>
    %cst_16 = arith.constant 1.000000e+00 : f32
    %29 = vector.broadcast %cst_16 : f32 to vector<1x16xf32>
    %30 = arith.addf %29, %28 : vector<1x16xf32>
    %cst_17 = arith.constant 1.000000e+00 : f32
    %31 = vector.broadcast %cst_17 : f32 to vector<1x16xf32>
    %32 = arith.divf %31, %30 : vector<1x16xf32>
    %33 = vector.shape_cast %32 : vector<1x16xf32> to vector<1x16x1xf32>
    %34 = vector.broadcast %33 : vector<1x16x1xf32> to vector<1x16x256xf32>
    %35 = arith.mulf %0, %34 : vector<1x16x256xf32>
    %c0_18 = arith.constant 0 : index
    %c0_19 = arith.constant 0 : index
    %c0_20 = arith.constant 0 : index
    %36 = vector.load %arg7[%c0_18, %c0_19, %c0_20] : memref<1x16x256xf32, #tpu.memory_space<vmem>>, vector<1x16x256xf32>
    tpu.vector_store %arg7[%c0_18, %c0_19, %c0_20], %35 {strides = array<i32>} : memref<1x16x256xf32, #tpu.memory_space<vmem>>, vector<1x16x256xf32>,
    return
  }
  func.func @transform_0(%arg0: i32) -> (i32, i32, i32) {
    %c0_i32 = arith.constant 0 : i32
    %c0_i32_0 = arith.constant 0 : i32
    %c0_i32_1 = arith.constant 0 : i32
    return %arg0, %c0_i32, %c0_i32_0 : i32, i32, i32
  }
  func.func @transform_1(%arg0: i32) -> (i32, i32) {
    %c0_i32 = arith.constant 0 : i32
    %c0_i32_0 = arith.constant 0 : i32
    %c0_i32_1 = arith.constant 0 : i32
    return %c0_i32, %c0_i32_0 : i32, i32
  }
  func.func @transform_2(%arg0: i32) -> (i32, i32) {
    %c0_i32 = arith.constant 0 : i32
    %c0_i32_0 = arith.constant 0 : i32
    %c0_i32_1 = arith.constant 0 : i32
    return %c0_i32, %c0_i32_0 : i32, i32
  }
  func.func @transform_3(%arg0: i32) -> (i32, i32) {
    %c0_i32 = arith.constant 0 : i32
    %c0_i32_0 = arith.constant 0 : i32
    %c0_i32_1 = arith.constant 0 : i32
    return %c0_i32, %c0_i32_0 : i32, i32
  }
  func.func @transform_4(%arg0: i32) -> (i32, i32) {
    %c0_i32 = arith.constant 0 : i32
    %c0_i32_0 = arith.constant 0 : i32
    %c0_i32_1 = arith.constant 0 : i32
    return %c0_i32, %c0_i32_0 : i32, i32
  }
  func.func @transform_5(%arg0: i32) -> i32 {
    %c0_i32 = arith.constant 0 : i32
    %c0_i32_0 = arith.constant 0 : i32
    return %c0_i32 : i32
  }
  func.func @transform_6(%arg0: i32) -> (i32, i32, i32) {
    %c0_i32 = arith.constant 0 : i32
    %c0_i32_0 = arith.constant 0 : i32
    %c0_i32_1 = arith.constant 0 : i32
    return %arg0, %c0_i32, %c0_i32_0 : i32, i32, i32
  }
}

</mosaic_0001>

<bundles_post_ra>
// kernel: tpu_custom_call.1
= control target key start
LH: loop header
LB: loop body
LE: loop exit
PB: predicated region body
PF: predicated region fallthrough
CT: control target
= control target key end

     0   :  { %s1277_s0 = inlined_call_operand.hbm [shape: f32[2,16,256], index: 0, kind: input, shape index: {}]   ;;  %s1278_s1 = inlined_call_operand.vmem [shape: f32[2,16], index: 1, kind: input, shape index: {}]   ;;  %s1279_s2 = inlined_call_operand.vmem [shape: f32[16,2], index: 2, kind: input, shape index: {}]   ;;  %s1280_s3 = inlined_call_operand.vmem [shape: f32[1,2], index: 3, kind: input, shape index: {}]   ;;  %s1281_s4 = inlined_call_operand.vmem [shape: f32[1,16], index: 4, kind: input, shape index: {}]   ;;  %s1282_s5 = inlined_call_operand.<no memory space> [shape: f32[1], index: 5, kind: input, shape index: {}]   ;;  %s1283_s6 = inlined_call_operand.hbm [shape: f32[2,16,256], index: 6, kind: output, shape index: {}]  }
   0x1   :  { %11 = sst [smem:[#allocation2]] %s1282_s5 }
   0x2   :  { %12 = vsyncpa [#allocation4], 0 }
   0x3   :  { %14 = vsyncpa [#allocation4 + $0x1], 0 }
   0x4   :  { %15 = vsyncpa [#allocation5], 0 }
   0x5   :  { %17 = vsyncpa [#allocation5 + $0x1], 0  ;;  %s1033_s23 = smov 0   ;;  %s1035_s24 = smov 0  }
   0x6   :  { %s1037_s25 = smov 0   ;;  %s1039_s26 = smov 0  }
   0x7 LB: > { %s1054_s5 = sadd.s32 4294967295, %s986_s26   ;;  %s815_s27 = sadd.s32 4294967294, %s986_s26   ;;  %s986_s26 = sphi %s1039_s26, %s1298_s26   ;;  %s982_s25 = sphi %s1037_s25, %s1297_s25   ;;  %s978_s24 = sphi %s1035_s24, %s1296_s24   ;;  %s974_s23 = sphi %s1033_s23, %s1295_s23  }
   0x8   : > { %s1058_s28 = sadd.s32 1, %s986_s26   ;;  %s30_s29 = sadd.s32 1, %s982_s25 }
   0x9   : > { %s27_s30 = ssub.s32 %s986_s26, %s1058_s28  ;;  %p37_p0 = scmp.ne.s32.totalorder %s982_s25, %s978_s24 }
   0xa   : > { %p28_p1 = scmp.eq.s32.totalorder %s27_s30, 0  ;;  %p38_p2 = scmp.eq.s32.totalorder %s986_s26, 0 }
   0xb   : > { %p43_p3 = scmp.ne.s32.totalorder %s978_s24, %s974_s23  ;;  %p44_p4 = scmp.eq.s32.totalorder %s1054_s5, 0 }
   0xc   : > { %s1070_s7 = scalar_select %p28_p1, %s982_s25, %s30_s29  }
   0xd   : > { %p1072_p5 = por %p38_p2, %p37_p0  ;;  %p1076_p6 = por %p44_p4, %p43_p3 }
   0xe   : > { %p172_p7 = scmp.eq.s32.totalorder %s1054_s5, 1  ;;  %p178_p8 = scmp.eq.s32.totalorder %s815_s27, 1 }
   0xf   : > { %s1287_s9 = scalar_select %p1076_p6, 1, 0 }
  0x10   : > { %p845_p10 = scmp.lt.s32.totalorder %s986_s26, 2  ;;  %p1083_p11 = por %p172_p7, %p37_p0 }
  0x11   : > { %p1087_p12 = por %p178_p8, %p43_p3  ;;  %s213_s12 = sand.u32 1, %s982_s25  }
  0x12   : > { %s1288_s10 = scalar_select %p1083_p11, 1, 0 }
  0x13   : > { %s1289_s11 = scalar_select %p1087_p12, 1, 0 }
  0x14   : > { %s831_s13 = sshll.u32 %s986_s26, 9  ;;  %s818_s14 = sshll.u32 %s213_s12, 5 }
  0x15   : > { %s1096_s17 = scalar_lea.hbm %s1277_s0, %s831_s13  ;;  %s217_s18 = scalar_lea.vmem [#allocation3], %s818_s14 }
  0x16   : > { %s224_s19 = sshll.u32 %s217_s18, 4  ;;  %p1100_p13 = pnand %p845_p10, %p1072_p5  ;;  %s1104_s19 = int_to_ptr.vmem [resolvable:$true] %s224_s19 }
  0x17   : > { %s1106_s21 = scalar_lea.sflag [#allocation4], %s213_s12  ;;  %s894_s22 = scalar_lea.hbm %s1096_s17, 512 }
  0x18   : > { %p895_p0 = scmp.ne.s32.totalorder %s1096_s17, %s894_s22  ;;  %p896_p1 = pneg %p1100_p13 }
  0x19   : > { %s899_s30 = scalar_lea.hbm %s1277_s0, 1024  ;;  %p900_p4 = scmp.lt.s32.totalorder %s1096_s17, %s1277_s0 }
  0x1a   : > { %p897_p2 = pnand %p896_p1, %p895_p0  ;;  %p901_p5 = scmp.lt.s32.totalorder %s899_s30, %s894_s22 }
  0x1c   : > { %p898_p3 = pneg %p897_p2  ;;  %p902_p7 = por %p901_p5, %p900_p4 }
  0x1e   : > { %p903_p8 = pnand %p902_p7, %p898_p3 }
  0x20   : > { %906 = shalt.err (!%p903_p8)
}
  0x21   : > { %s907_s12 = scalar_lea.vmem %s1104_s19, 512  ;;  %s988_s14 = smov [#allocation3]  }
  0x22   : > { %p908_p10 = scmp.ne.s32.totalorder %s1104_s19, %s907_s12  ;;  %s912_s15 = sshll.u32 %s988_s14, 4  ;;  %s913_s15 = int_to_ptr.vmem [resolvable:$false] %s912_s15 }
  0x23   : > { %s914_s16 = scalar_lea.vmem %s913_s15, 1024  ;;  %p915_p2 = scmp.lt.s32.totalorder %s1104_s19, %s913_s15 }
  0x24   : > { %p910_p9 = pnand %p908_p10, %p896_p1  ;;  %p916_p12 = scmp.lt.s32.totalorder %s914_s16, %s907_s12 }
  0x26   : > { %p911_p0 = pneg %p910_p9  ;;  %p917_p11 = por %p916_p12, %p915_p2 }
  0x28   : > { %p918_p6 = pnand %p917_p11, %p911_p0 }
  0x2a   : > { %921 = shalt.err (!%p918_p6)
}
  0x2b   : > { %s989_s18 = smov 256   ;;  %s990_s22 = smov 16  }
  0x2c   : > { %840 = dma.hbm_to_vmem [thread:$0]  (!%p1100_p13), %s1096_s17, 512, %s1104_s19, %s1106_s21, %s989_s18, %s989_s18, %s990_s22  }
  0x2d   : > { %p821_p9 = scmp.ge.s32.totalorder %s986_s26, 1  ;;  %p232_p1 = scmp.lt.s32.totalorder %s986_s26, 3 }
  0x2f   : > { %p233_p3 = pnand %p821_p9, %p232_p1 }
  0x30   : > { %s1130_s27 = sand.u32 (!%p233_p3), 1, %s978_s24   ;;  %p1291_p6 = scmp.ne.s32.totalorder (!%p233_p3), %s1287_s9, 0 }
  0x31   : > { %236 = sbr.rel (%p233_p3) target bundleno = 961 (0x3c1), region = 44  ;;  %s822_s29 = sshll.u32 (!%p233_p3), %s1130_s27, 5 }
  0x32   : > { %s239_s30 = scalar_lea.sflag (!%p233_p3), [#allocation4], %s1130_s27  ;;  %s242_s8 = scalar_lea.vmem (!%p233_p3), [#allocation3], %s822_s29 }
  0x36   : > { %965 = dma.done.wait (%p1291_p6), %s239_s30, 512  }
  0x37   : > { %967 = vsyncadd (%p1291_p6), %s239_s30, 4294966784  ;;  %v290_v0 = vlaneseq  ;;  %v1144_v3 = vld [vmem:[%s242_s8] sm:$0xff]  ;;  %v1146_v4 = vld [vmem:[%s242_s8 + $0x8] sm:$0xff]  ;;  %v991_v13 = vmov 0   ;;  %vm347_vm0 = vcmask 130112   ;;  %vm358_vm1 = vcmask 1041409  }
  0x38   : > { %v1148_v5 = vld [vmem:[%s242_s8 + $0x10] sm:$0xff]  ;;  %v275_v6 = vadd.f32 %v1146_v4, %v1144_v3  ;;  %v1152_v7 = vld [vmem:[%s242_s8 + $0x18] sm:$0xff]  ;;  %v283_v8 = vld [vmem:[%s1278_s1] sm:$0x3]  ;;  %884 = vset.pattern.permute.xlu1 %v991_v13  ;;  %885 = vset.pattern.permute.xlu0 %v991_v13  ;;  %vm361_vm2 = vcmask 123904   ;;  %s288_s15 = sld [smem:[#allocation2]] }
  0x39   : > { %v1141_v1 = vshrl.u32 %v290_v0, 7  ;;  %v278_v10 = vadd.f32 %v1152_v7, %v1148_v5  ;;  %v284_v14 = vld [vmem:[%s1279_s2] sm:$0xff]  ;;  %v1169_v22 = vld [vmem:[%s1279_s2 + $0x8] sm:$0xff]  ;;  %v337_v51 = vand.u32 127, %v290_v0  ;;  %vm654_vm4 = vcmask 1042434   ;;  %s270_s22 = scalar_lea.vmem [#allocation6], %s822_s29 }
  0x3a   : > { %276 = vadd.xlane.f32.xlu0 %v275_v6  ;;  %v824_v15 = vld [vmem:[%s1280_s3] ss:$0 sm:$0xff]  ;;  %vm656_vm5 = vcmask 1043459   ;;  %vm658_vm6 = vcmask 1044484   ;;  %vm660_vm7 = vcmask 1045509   ;;  %vm662_vm8 = vcmask 1046534  }
  0x3b   : > { %v292_v2 = vsub.s32 0, %v1141_v1  ;;  %v303_v11 = vsub.s32 1, %v1141_v1  ;;  %v397_v30 = vsub.s32 2, %v1141_v1  ;;  %v411_v34 = vsub.s32 4, %v1141_v1  ;;  %s742_s30 = sshll.u32 %s270_s22, 4  ;;  %s832_s8 = sshll.u32 %s1054_s5, 9  ;;  %s1225_s30 = int_to_ptr.vmem [resolvable:$true] %s742_s30 }
  0x3c   : > { %v425_v38 = vsub.s32 6, %v1141_v1  ;;  %v404_v39 = vsub.s32 3, %v1141_v1  ;;  %v418_v44 = vsub.s32 5, %v1141_v1  ;;  %v432_v48 = vsub.s32 7, %v1141_v1  ;;  %s1232_s19 = scalar_lea.hbm %s1283_s6, %s832_s8  ;;  %s729_s5 = scalar_lea.sflag [#allocation5], %s1130_s27 }
  0x3d   : > { %v293_v9 = vrot.slane %v283_v8, %v292_v2  ;;  %v304_v12 = vrot.slane %v283_v8, %v303_v11  ;;  %v384_v16 = vrot.slane %v284_v14, %v292_v2  ;;  %v391_v19 = vrot.slane %v284_v14, %v303_v11  ;;  %s922_s29 = scalar_lea.vmem %s1225_s30, 512  ;;  %p1292_p12 = scmp.ne.s32.totalorder %s1288_s10, 0 }
  0x3e   : > { %279 = vadd.xlane.f32.xlu0 %v278_v10  ;;  %v440_v24 = vrot.slane %v1169_v22, %v292_v2  ;;  %v447_v29 = vrot.slane %v1169_v22, %v303_v11  ;;  %v398_v33 = vrot.slane %v284_v14, %v397_v30  ;;  %v454_v35 = vrot.slane %v1169_v22, %v397_v30  ;;  %p923_p11 = scmp.ne.s32.totalorder %s1225_s30, %s922_s29  ;;  %s992_s20 = smov [#allocation6]  }
  0x3f   : > { %295 = vbcast.lane.b32.xlu1 %v293_v9, 256  ;;  %v412_v37 = vrot.slane %v284_v14, %v411_v34  ;;  %v405_v40 = vrot.slane %v284_v14, %v404_v39  ;;  %v482_v41 = vrot.slane %v1169_v22, %v425_v38  ;;  %v461_v42 = vrot.slane %v1169_v22, %v404_v39  ;;  %s926_s21 = sshll.u32 %s992_s20, 4  ;;  %s927_s21 = int_to_ptr.vmem [resolvable:$false] %s926_s21 }
  0x40   : > { %v468_v43 = vrot.slane %v1169_v22, %v411_v34  ;;  %v419_v45 = vrot.slane %v284_v14, %v418_v44  ;;  %v475_v46 = vrot.slane %v1169_v22, %v418_v44  ;;  %v426_v47 = vrot.slane %v284_v14, %v425_v38  ;;  %p924_p13 = pnand %p923_p11, %p1292_p12  ;;  %s928_s13 = scalar_lea.vmem %s927_s21, 1024 }
  0x41   : > { %v433_v49 = vrot.slane %v284_v14, %v432_v48  ;;  %v342_v52 = vadd.s32 4294967288, %v337_v51  ;;  %v1187_v56 = vsub.s32 %v337_v51, %v1141_v1  ;;  %v489_v6 = vrot.slane %v1169_v22, %v432_v48  ;;  %p929_p5 = scmp.lt.s32.totalorder %s1225_s30, %s927_s21  ;;  %p930_p7 = scmp.lt.s32.totalorder %s928_s13, %s922_s29 }
  0x42   : > { %vm664_vm9 = vcmask 1047559   ;;  %vm675_vm10 = vcmask 15360   ;;  %p925_p4 = pneg %p924_p13 }
  0x43   : > { %299 = vbcast.lane.b32.xlu1 %v293_v9, 264  ;;  %v345_v54 = vsub.s32 %v342_v52, %v1141_v1  ;;  %p931_p8 = por %p930_p7, %p929_p5 }
  0x45   : > { %p932_p10 = pnand %p931_p8, %p925_p4 }
  0x47   : > { %310 = vbcast.lane.b32.xlu1 %v304_v12, 264 }
  0x54   : > { %306 = vbcast.lane.b32.xlu0 %v304_v12, 256 }
  0x58   : > { %371 = vbcast.lane.b32.xlu0 %v824_v15, 256 }
  0x5c   : > { %386 = vbcast.lane.b32.xlu0 %v384_v16, 256 }
  0x60   : > { %393 = vbcast.lane.b32.xlu0 %v391_v19, 256 }
  0x64   : > { %442 = vbcast.lane.b32.xlu0 %v440_v24, 256 }
  0x68   : > { %449 = vbcast.lane.b32.xlu0 %v447_v29, 256 }
  0x6c   : > { %400 = vbcast.lane.b32.xlu0 %v398_v33, 256 }
  0x70   : > { %456 = vbcast.lane.b32.xlu0 %v454_v35, 256 }
  0x74   : > { %407 = vbcast.lane.b32.xlu0 %v405_v40, 256 }
  0x78   : > { %463 = vbcast.lane.b32.xlu0 %v461_v42, 256 }
  0x7c   : > { %470 = vbcast.lane.b32.xlu0 %v468_v43, 256 }
  0x80   : > { %421 = vbcast.lane.b32.xlu0 %v419_v45, 256 }
  0x84   : > { %477 = vbcast.lane.b32.xlu0 %v475_v46, 256 }
  0x88   : > { %428 = vbcast.lane.b32.xlu0 %v426_v47, 256 }
  0x8c   : > { %435 = vbcast.lane.b32.xlu0 %v433_v49, 256 }
  0xb1   : > { %v296_v17 = vpop.permute.xlu1 %295 }
  0xb5   : > { %v300_v26 = vpop.permute.xlu1 %299 }
  0xb9   : > { %v311_v32 = vpop.permute.xlu1 %310 }
  0xc3   : > { %v277_v18 = vpop.xlane.xlu0 %276 }
  0xc4   : > { %v281_v20 = vmul.f32 0.00390625, %v277_v18 }
  0xc6   : > { %v316_v21 = vmul.f32 %v296_v17, %v281_v20  ;;  %v376_v17 = vstv %s288_s15 }
  0xc7   : > { %v280_v23 = vpop.xlane.xlu0 %279 }
  0xc8   : > { %v282_v25 = vmul.f32 0.00390625, %v280_v23  ;;  %325 = vperm.xlu1 %884, %v316_v21  }
  0xca   : > { %v317_v27 = vmul.f32 %v300_v26, %v282_v25  ;;  %v319_v36 = vmul.f32 %v311_v32, %v282_v25 }
  0xcb   : > { %v307_v28 = vpop.permute.xlu0 %306 }
  0xcc   : > { %328 = vperm.xlu1 %884, %v317_v27   ;;  %v318_v31 = vmul.f32 %v307_v28, %v281_v20 }
  0xcf   : > { %v372_v1 = vpop.permute.xlu0 %371 }
  0xd0   : > { %331 = vperm.xlu1 %884, %v318_v31  }
  0xd3   : > { %v387_v8 = vpop.permute.xlu0 %386 }
  0xd4   : > { %334 = vperm.xlu1 %884, %v319_v36  }
  0xd7   : > { %v394_v9 = vpop.permute.xlu0 %393 }
  0xd8   : > { %414 = vbcast.lane.b32.xlu1 %v412_v37, 256 }
  0xdb   : > { %v443_v10 = vpop.permute.xlu0 %442 }
  0xdc   : > { %484 = vbcast.lane.b32.xlu1 %v482_v41, 256 }
  0xdf   : > { %v450_v11 = vpop.permute.xlu0 %449 }
  0xe3   : > { %v401_v12 = vpop.permute.xlu0 %400 }
  0xe7   : > { %v457_v14 = vpop.permute.xlu0 %456 }
  0xeb   : > { %v408_v16 = vpop.permute.xlu0 %407 }
  0xef   : > { %v464_v20 = vpop.permute.xlu0 %463 }
  0xf3   : > { %v471_v25 = vpop.permute.xlu0 %470 }
  0xf7   : > { %v422_v28 = vpop.permute.xlu0 %421 }
  0xfb   : > { %v478_v33 = vpop.permute.xlu0 %477 }
  0xff   : > { %v429_v36 = vpop.permute.xlu0 %428 }
 0x103   : > { %v436_v42 = vpop.permute.xlu0 %435 }
 0x143   : > { %v326_v50 = vpop.permute.xlu1 %325 }
 0x144   : > { %v341_v59 = vrot.slane %v326_v50, %v1187_v56 }
 0x147   : > { %v329_v53 = vpop.permute.xlu1 %328 }
 0x148   : > { %v346_v57 = vrot.slane %v329_v53, %v345_v54 }
 0x14a   : > { %v348_v62 = vsel %vm347_vm0, %v346_v57, %v341_v59 }
 0x14b   : > { %v332_v55 = vpop.permute.xlu1 %331 }
 0x14c   : > { %v352_v60 = vrot.slane %v332_v55, %v1187_v56 }
 0x14f   : > { %v335_v58 = vpop.permute.xlu1 %334 }
 0x150   : > { %v356_v61 = vrot.slane %v335_v58, %v345_v54 }
 0x152   : > { %v357_v63 = vsel %vm347_vm0, %v356_v61, %v352_v60 }
 0x153   : > { %v359_v0 = vsel %vm358_vm1, %v357_v63, %v348_v62  ;;  %v415_v13 = vpop.permute.xlu1 %414 }
 0x154   : > { %v362_v2 = vsel %vm361_vm2, %v359_v0, 0.0 }
 0x155   : > { %363 = vadd.xlane.f32.xlu1 %v362_v2 }
 0x157   : > { %v485_v15 = vpop.permute.xlu1 %484 }
 0x166   : > { %491 = vbcast.lane.b32.xlu1 %v489_v6, 256 }
 0x1de   : > { %v364_v18 = vpop.xlane.xlu1 %363 }
 0x1df   : > { %v374_v19 = vadd.f32 %v372_v1, %v364_v18 }
 0x1e1   : > { %vm375_vm3 = vcmp.ge.f32.partialorder %v374_v19, 0.0  ;;  %v377_v21 = vmul.f32 %v376_v17, %v374_v19 }
 0x1e2   : > { %v492_v41 = vpop.permute.xlu1 %491 }
 0x1e3   : > { %v378_v23 = vsel %vm375_vm3, %v374_v19, %v377_v21 }
 0x1e4   : > { %v509_v22 = vmul.f32 %v387_v8, %v378_v23  ;;  %v510_v24 = vmul.f32 %v394_v9, %v378_v23  ;;  %v518_v26 = vmul.f32 %v450_v11, %v378_v23  ;;  %v517_v27 = vmul.f32 %v443_v10, %v378_v23 }
 0x1e5   : > { %v519_v29 = vmul.f32 %v457_v14, %v378_v23  ;;  %v511_v30 = vmul.f32 %v401_v12, %v378_v23  ;;  %v520_v31 = vmul.f32 %v464_v20, %v378_v23  ;;  %v512_v32 = vmul.f32 %v408_v16, %v378_v23 }
 0x1e6   : > { %542 = vperm.xlu0 %885, %v509_v22   ;;  %545 = vperm.xlu1 %884, %v510_v24   ;;  %v521_v34 = vmul.f32 %v471_v25, %v378_v23  ;;  %v513_v35 = vmul.f32 %v415_v13, %v378_v23  ;;  %v522_v37 = vmul.f32 %v478_v33, %v378_v23 }
 0x1e7   : > { %v514_v38 = vmul.f32 %v422_v28, %v378_v23  ;;  %v523_v39 = vmul.f32 %v485_v15, %v378_v23  ;;  %v515_v40 = vmul.f32 %v429_v36, %v378_v23  ;;  %v524_v43 = vmul.f32 %v492_v41, %v378_v23 }
 0x1e8   : > { %v516_v44 = vmul.f32 %v436_v42, %v378_v23 }
 0x1ea   : > { %569 = vperm.xlu0 %885, %v518_v26   ;;  %566 = vperm.xlu1 %884, %v517_v27  }
 0x1ee   : > { %572 = vperm.xlu0 %885, %v519_v29   ;;  %548 = vperm.xlu1 %884, %v511_v30  }
 0x1f2   : > { %575 = vperm.xlu0 %885, %v520_v31   ;;  %551 = vperm.xlu1 %884, %v512_v32  }
 0x1f6   : > { %578 = vperm.xlu0 %885, %v521_v34   ;;  %554 = vperm.xlu1 %884, %v513_v35   ;;  %v825_v34 = vld [vmem:[%s1281_s4] ss:$0 sm:$0xff] }
 0x1fa   : > { %581 = vperm.xlu0 %885, %v522_v37   ;;  %557 = vperm.xlu1 %884, %v514_v38  }
 0x1fe   : > { %584 = vperm.xlu0 %885, %v523_v39   ;;  %560 = vperm.xlu1 %884, %v515_v40  }
 0x202   : > { %587 = vperm.xlu0 %885, %v524_v43   ;;  %563 = vperm.xlu1 %884, %v516_v44  }
 0x261   : > { %v543_v45 = vpop.permute.xlu0 %542  ;;  %v546_v46 = vpop.permute.xlu1 %545 }
 0x262   : > { %v596_v60 = vrot.slane %v546_v46, %v1187_v56  ;;  %v592_v61 = vrot.slane %v543_v45, %v1187_v56 }
 0x264   : > { %v653_v12 = vsel %vm358_vm1, %v596_v60, %v592_v61 }
 0x265   : > { %v570_v47 = vpop.permute.xlu0 %569  ;;  %v567_v48 = vpop.permute.xlu1 %566 }
 0x266   : > { %v624_v57 = vrot.slane %v567_v48, %v1187_v56  ;;  %v628_v58 = vrot.slane %v570_v47, %v1187_v56 }
 0x268   : > { %v666_v8 = vsel %vm358_vm1, %v628_v58, %v624_v57 }
 0x269   : > { %v573_v49 = vpop.permute.xlu0 %572  ;;  %v549_v50 = vpop.permute.xlu1 %548 }
 0x26a   : > { %v632_v62 = vrot.slane %v573_v49, %v1187_v56  ;;  %v600_v63 = vrot.slane %v549_v50, %v1187_v56 }
 0x26c   : > { %v667_v13 = vsel %vm654_vm4, %v632_v62, %v666_v8  ;;  %v655_v16 = vsel %vm654_vm4, %v600_v63, %v653_v12 }
 0x26d   : > { %v576_v51 = vpop.permute.xlu0 %575  ;;  %v552_v52 = vpop.permute.xlu1 %551 }
 0x26e   : > { %v636_v0 = vrot.slane %v576_v51, %v1187_v56  ;;  %v604_v2 = vrot.slane %v552_v52, %v1187_v56 }
 0x270   : > { %v668_v17 = vsel %vm656_vm5, %v636_v0, %v667_v13  ;;  %v657_v19 = vsel %vm656_vm5, %v604_v2, %v655_v16 }
 0x271   : > { %v579_v53 = vpop.permute.xlu0 %578  ;;  %v555_v54 = vpop.permute.xlu1 %554 }
 0x272   : > { %v640_v6 = vrot.slane %v579_v53, %v1187_v56  ;;  %v608_v9 = vrot.slane %v555_v54, %v1187_v56 }
 0x274   : > { %v669_v20 = vsel %vm658_vm6, %v640_v6, %v668_v17  ;;  %v659_v23 = vsel %vm658_vm6, %v608_v9, %v657_v19 }
 0x275   : > { %v582_v55 = vpop.permute.xlu0 %581  ;;  %v558_v59 = vpop.permute.xlu1 %557 }
 0x276   : > { %v644_v10 = vrot.slane %v582_v55, %v1187_v56  ;;  %v612_v14 = vrot.slane %v558_v59, %v1187_v56 }
 0x278   : > { %v670_v22 = vsel %vm660_vm7, %v644_v10, %v669_v20  ;;  %v661_v26 = vsel %vm660_vm7, %v612_v14, %v659_v23 }
 0x279   : > { %v585_v1 = vpop.permute.xlu0 %584  ;;  %v561_v11 = vpop.permute.xlu1 %560 }
 0x27a   : > { %v648_v15 = vrot.slane %v585_v1, %v1187_v56  ;;  %v616_v18 = vrot.slane %v561_v11, %v1187_v56 }
 0x27c   : > { %v671_v28 = vsel %vm662_vm8, %v648_v15, %v670_v22  ;;  %v663_v29 = vsel %vm662_vm8, %v616_v18, %v661_v26 }
 0x27d   : > { %v588_v21 = vpop.permute.xlu0 %587  ;;  %v564_v24 = vpop.permute.xlu1 %563 }
 0x27e   : > { %v652_v25 = vrot.slane %v588_v21, %v1187_v56  ;;  %v620_v27 = vrot.slane %v564_v24, %v1187_v56 }
 0x280   : > { %v672_v30 = vsel %vm664_vm9, %v652_v25, %v671_v28  ;;  %v665_v31 = vsel %vm664_vm9, %v620_v27, %v663_v29 }
 0x281   : > { %v679_v32 = vsel %vm675_vm10, %v672_v30, 0.0  ;;  %v676_v33 = vsel %vm675_vm10, %v665_v31, 0.0 }
 0x282   : > { %680 = vadd.xlane.f32.xlu0 %v679_v32  ;;  %677 = vadd.xlane.f32.xlu1 %v676_v33 }
 0x293   : > { %692 = vbcast.lane.b32.xlu1 %v825_v34, 264 }
 0x298   : > { %688 = vbcast.lane.b32.xlu0 %v825_v34, 256 }
 0x30b   : > { %v681_v35 = vpop.xlane.xlu0 %680  ;;  %v678_v36 = vpop.xlane.xlu1 %677 }
 0x30f   : > { %v689_v37 = vpop.permute.xlu0 %688  ;;  %v693_v38 = vpop.permute.xlu1 %692 }
 0x310   : > { %v696_v39 = vadd.f32 %v689_v37, %v678_v36  ;;  %v697_v56 = vadd.f32 %v693_v38, %v681_v35 }
 0x312   : > { %v698_v40 = vsub.f32 0.0, %v696_v39  ;;  %v699_v41 = vsub.f32 0.0, %v697_v56 }
 0x314   : > { %v700_v42 = vmul.f32 1.442695, %v698_v40  ;;  %v702_v43 = vmul.f32 1.442695, %v699_v41 }
 0x316   : > { %886 = vpow2.f32 %v700_v42 }
 0x317   : > { %888 = vpow2.f32 %v702_v43 }
 0x323   : > { %v887_v44 = vpop.eup %886 }
 0x324   : > { %v889_v45 = vpop.eup %888  ;;  %v704_v46 = vadd.f32 1.0, %v887_v44 }
 0x325   : > { %v705_v47 = vadd.f32 1.0, %v889_v45 }
 0x326   : > { %890 = vrcp.f32 %v704_v46 }
 0x327   : > { %892 = vrcp.f32 %v705_v47 }
 0x333   : > { %v891_v48 = vpop.eup %890 }
 0x334   : > { %v893_v49 = vpop.eup %892  ;;  %712 = vperm.xlu1 %884, %v891_v48  }
 0x335   : > { %717 = vperm.xlu0 %885, %v893_v49  }
 0x3af   : > { %v713_v50 = vpop.permute.xlu1 %712 }
 0x3b0   : > { %v720_v51 = vmul.f32 %v713_v50, %v1144_v3  ;;  %v721_v52 = vmul.f32 %v713_v50, %v1146_v4  ;;  %v718_v53 = vpop.permute.xlu0 %717 }
 0x3b1   : > { %v722_v54 = vmul.f32 %v718_v53, %v1148_v5  ;;  %v723_v55 = vmul.f32 %v718_v53, %v1152_v7 }
 0x3b2   : > { %724 = vst [vmem:[%s270_s22] sm:$0xff] %v720_v51  ;;  %725 = vst [vmem:[%s270_s22 + $0x8] sm:$0xff] %v721_v52 }
 0x3b3   : > { %726 = vst [vmem:[%s270_s22 + $0x10] sm:$0xff] %v722_v54  ;;  %727 = vst [vmem:[%s270_s22 + $0x18] sm:$0xff] %v723_v55 }
 0x3b4   : > { %935 = shalt.err (!%p932_p10)
}
 0x3b5   : > { %s936_s12 = scalar_lea.hbm %s1232_s19, 512  ;;  %s940_s16 = scalar_lea.hbm %s1283_s6, 1024 }
 0x3b6   : > { %p937_p0 = scmp.ne.s32.totalorder %s1232_s19, %s936_s12  ;;  %p941_p1 = scmp.lt.s32.totalorder %s1232_s19, %s1283_s6 }
 0x3b7   : > { %p942_p3 = scmp.lt.s32.totalorder %s940_s16, %s936_s12 }
 0x3b8   : > { %p938_p2 = pnand %p937_p0, %p1292_p12 }
 0x3b9   : > { %p943_p6 = por %p942_p3, %p941_p1 }
 0x3ba   : > { %p939_p9 = pneg %p938_p2 }
 0x3bc   : > { %p944_p11 = pnand %p943_p6, %p939_p9 }
 0x3be   : > { %947 = shalt.err (!%p944_p11)
}
 0x3bf   : > { %s993_s8 = smov 256   ;;  %s994_s17 = smov 16  }
 0x3c0   : > { %835 = dma.vmem_to_hbm [thread:$0]  (%p1292_p12), %s1225_s30, 512, %s1232_s19, %s729_s5, %s993_s8, %s993_s8, %s994_s17  }
 0x3c1 PF: > { %s757_s9 = sand.u32 1, %s974_s23   ;;  %p1293_p13 = scmp.ne.s32.totalorder %s1289_s11, 0 }
 0x3c2   : > { %p1294_p4 = scmp.ge.s32.totalorder %s986_s26, 2  ;;  %s758_s29 = scalar_lea.sflag [#allocation5], %s757_s9 }
 0x3c4   : > { %p842_p5 = pnand %p1294_p4, %p1293_p13 }
 0x3c6   : > { %p843_p7 = pneg %p842_p5 }
 0x3c8   : > { %969 = dma.done.wait (%p843_p7), %s758_s29, 512  }
 0x3c9   : > { %971 = vsyncadd (%p843_p7), %s758_s29, 4294966784  ;;  %p20_p8 = scmp.ge.s32.totalorder %s1058_s28, 4   ;;  %s1295_s23 = smov %s978_s24 }
 0x3ca   : > { %s1296_s24 = smov %s982_s25  ;;  %s1297_s25 = smov %s1070_s7 }
 0x3cb   : > { %s1298_s26 = smov %s1058_s28  ;;  %22 = sbr.rel (!%p20_p8) target bundleno = 7 (0x7), region = 89 }
 0x3d0   :  { %763 = vsyncpa [#allocation4], 1 }
 0x3d1   :  { %765 = vsyncpa [#allocation4 + $0x1], 1 }
 0x3d2   :  { %766 = vsyncpa [#allocation5], 1 }
 0x3d3   :  { %768 = vsyncpa [#allocation5 + $0x1], 1 }

</bundles_post_ra>
